<compile_context>
chip_gen: v7x
topology: tpu7x:2x2x1
jax: 0.10.0
libtpu: 0.0.40
codegen_flags: <defaults>
</compile_context>

<pallas_src>
import functools

import jax
import jax.numpy as jnp
from jax.experimental import pallas as pl
from jax.experimental.pallas import tpu as pltpu


def _round_up(x, m):
    return (x + m - 1) // m * m


# ---------------------------------------------------------------------------
# Fused kernel: lin_v + lin_q (one MXU pass), glimpse scale, logits, softmax
# ---------------------------------------------------------------------------
def _self_attention_kernel(x_ref, p_ref, o_ref, *, B, G, V, Q, H, F2):
    # x_ref: (B*V + B*Q, F2)   rows 0:B*V = [v | 0], rows B*V: = [0 | q]
    # p_ref: (F2 + 8 + G*V, H) = [W_bd (F2 rows) ; bv ; bq ; pad(6) ; hw_expanded]
    # o_ref: (B, G, V, Q)
    nV = B * V
    nQ = B * Q

    w = p_ref[0:F2, :]                          # (F2, H)  block-diag [wv; wq]
    bv = p_ref[F2:F2 + 1, :]                    # (1, H)
    bq = p_ref[F2 + 1:F2 + 2, :]                # (1, H)
    hw = p_ref[F2 + 8:F2 + 8 + G * V, :]        # (G*V, H) pre-expanded h_weight

    # One MXU dispatch covers BOTH FCNet projections (block-diagonal K packing).
    proj = jnp.dot(x_ref[...], w, preferred_element_type=jnp.float32)
    v_h = jnp.maximum(proj[0:nV, :] + bv, 0.0)          # (B*V, H) = relu(lin_v)
    q_h = jnp.maximum(proj[nV:nV + nQ, :] + bq, 0.0)    # (B*Q, H) = relu(lin_q)

    # Static unroll over batch; both glimpses share ONE logits dot per batch.
    for b in range(B):
        vb = v_h[b * V:(b + 1) * V, :]                  # (V, H)
        qb = q_h[b * Q:(b + 1) * Q, :]                  # (Q, H)
        # Glimpses stacked along sublanes; hw already (G*V, H) so no
        # broadcast_in_dim is emitted inside the unrolled loop.
        lhs = jnp.concatenate([vb] * G, axis=0) * hw    # (G*V, H)
        logits = jax.lax.dot_general(
            lhs, qb,
            dimension_numbers=(((1,), (1,)), ((), ())),
            preferred_element_type=jnp.float32)         # (G*V, Q)
        # h_bias add omitted: per-glimpse constant over the flattened (V*Q)
        # softmax axis -> cannot change the output.
        for g in range(G):
            lg = logits[g * V:(g + 1) * V, :]           # (V, Q) sublane slice
            m = jnp.max(jnp.max(lg, axis=1, keepdims=True),
                        axis=0, keepdims=True)          # (1, 1)
            e = jnp.exp(lg - m)
            s = jnp.sum(jnp.sum(e, axis=1, keepdims=True),
                        axis=0, keepdims=True)          # (1, 1)
            atten = e * pl.reciprocal(s, approx=True)   # EUP slot, frees VALU
            o_ref[b, g, :, :] = atten.astype(o_ref.dtype)


# ---------------------------------------------------------------------------
# Module forward (single pallas_call, 2 packed inputs)
# ---------------------------------------------------------------------------
def self_attention_forward(v, q, wv, bv, wq, bq, h_weight, h_bias):
    """v: (B, V, Fv), q: (B, Q, Fq) -> attention (B, G, V, Q)."""
    del h_bias  # softmax over flattened (V*Q) is invariant to per-glimpse bias
    B, V_NUM, FV = v.shape
    Bq, Q_NUM, FQ = q.shape
    assert B == Bq
    H = wv.shape[1]
    G = h_weight.shape[0]
    f32 = jnp.float32

    # ---- activations: one (B*(V+Q), F2) array, block-diagonal K layout.
    F2 = _round_up(FV + FQ, 8)
    nV, nQ = B * V_NUM, B * Q_NUM
    x_pack = jnp.zeros((nV + nQ, F2), f32)
    x_pack = x_pack.at[:nV, :FV].set(v.reshape(nV, FV).astype(f32))
    x_pack = x_pack.at[nV:, FV:FV + FQ].set(q.reshape(nQ, FQ).astype(f32))

    # ---- params: [W_bd ; bv ; bq ; pad to sublane-aligned ; hw expanded].
    w_bd = jnp.zeros((F2, H), f32)
    w_bd = w_bd.at[:FV, :].set(wv.astype(f32))
    w_bd = w_bd.at[FV:FV + FQ, :].set(wq.astype(f32))
    bias_blk = jnp.zeros((8, H), f32)
    bias_blk = bias_blk.at[0, :].set(bv.reshape(H).astype(f32))
    bias_blk = bias_blk.at[1, :].set(bq.reshape(H).astype(f32))
    hw_exp = jnp.repeat(h_weight.reshape(G, H).astype(f32), V_NUM, axis=0)
    p_pack = jnp.concatenate([w_bd, bias_blk, hw_exp], axis=0)

    kernel = functools.partial(_self_attention_kernel, B=B, G=G, V=V_NUM,
                               Q=Q_NUM, H=H, F2=F2)

    def vmem_spec():
        return pl.BlockSpec(memory_space=pltpu.MemorySpace.VMEM)

    return pl.pallas_call(
        kernel,
        out_shape=jax.ShapeDtypeStruct((B, G, V_NUM, Q_NUM), jnp.float32),
        in_specs=[vmem_spec(), vmem_spec()],
        out_specs=vmem_spec(),
    )(x_pack, p_pack)


# ---------------------------------------------------------------------------
# Pure-JAX reference (keeps h_bias, flatten-softmax) for correctness checking
# ---------------------------------------------------------------------------
def _reference(v, q, wv, bv, wq, bq, hw, hb):
    v_ = jax.nn.relu(jnp.einsum('bvf,fh->bvh', v, wv) + bv)     # (B, V, H)
    q_ = jax.nn.relu(jnp.einsum('bqf,fh->bqh', q, wq) + bq)     # (B, Q, H)
    h_ = v_[:, None, :, :] * hw[None, :, None, :]               # (B, G, V, H)
    logits = jnp.einsum('bgvh,bqh->bgvq', h_, q_)
    logits = logits + hb[None, :, None, :]                      # (1, G, 1, 1)
    B, G, V, Q = logits.shape
    a = jax.nn.softmax(logits.reshape(B, G, V * Q), axis=2)
    return a.reshape(B, G, V, Q)


if __name__ == "__main__":
    # Small shapes consistent with the module.
    B, V_NUM, Q_NUM = 2, 8, 8
    V_FEAT, Q_FEAT = 16, 16
    MID, GLIMPSES = 8, 2
    HIDDEN = int(MID * 3)          # hidden_aug = 3

    key = jax.random.PRNGKey(0)
    ks = jax.random.split(key, 8)
    v = jax.random.normal(ks[0], (B, V_NUM, V_FEAT), jnp.float32)
    q = jax.random.normal(ks[1], (B, Q_NUM, Q_FEAT), jnp.float32)

    wv_v = jax.random.normal(ks[2], (V_FEAT, HIDDEN), jnp.float32) * 0.1
    bv = jax.random.normal(ks[3], (HIDDEN,), jnp.float32) * 0.1
    wq_v = jax.random.normal(ks[4], (Q_FEAT, HIDDEN), jnp.float32) * 0.1
    bq = jax.random.normal(ks[5], (HIDDEN,), jnp.float32) * 0.1
    h_weight = jax.random.normal(ks[6], (GLIMPSES, HIDDEN), jnp.float32)
    h_bias = jax.random.normal(ks[7], (GLIMPSES, 1), jnp.float32)

    # weight_norm(dim=None): effective weight = g * w_v / ||w_v||_F (scalar g).
    gv, gq = jnp.float32(1.5), jnp.float32(0.8)
    wv = gv * wv_v / jnp.linalg.norm(wv_v)
    wq = gq * wq_v / jnp.linalg.norm(wq_v)

    # TODO(synk): Dropout (train-mode) not implemented; drop=0.0 -> identity.

    out = self_attention_forward(v, q, wv, bv, wq, bq, h_weight, h_bias)
    out = jax.block_until_ready(out)

    assert out.shape == (B, GLIMPSES, V_NUM, Q_NUM)

    # Correctness vs pure-JAX reference (which includes h_bias, flatten-softmax).
    ref = _reference(v, q, wv, bv, wq, bq, h_weight, h_bias)
    assert bool(jnp.allclose(out, ref, rtol=1e-2, atol=1e-3)), "mismatch vs reference"

    # Softmax over flattened (V*Q) must sum to ~1 per (batch, glimpse)
    # (approx reciprocal -> tiny deviation allowed).
    sums = out.reshape(B, GLIMPSES, -1).sum(-1)
    assert bool(jnp.allclose(sums, 1.0, atol=1e-2))
    print("KERNEL_OK")
</pallas_src>

<mosaic_0001>
module attributes {stable_mosaic.version = 11 : i64} {
  func.func @_self_attention_kernel(%arg0: memref<32x32xf32, #tpu.memory_space<vmem>>, %arg1: memref<56x24xf32, #tpu.memory_space<vmem>>, %arg2: memref<2x2x8x8xf32, #tpu.memory_space<vmem>>) attributes {dimension_semantics = [], scalar_prefetch = 0 : i64, scratch_operands = 0 : i64, tpu.core_type = #tpu.core_type<tc>} {
    %c0 = arith.constant 0 : index
    %c0_0 = arith.constant 0 : index
    %0 = vector.load %arg1[%c0, %c0_0] : memref<56x24xf32, #tpu.memory_space<vmem>>, vector<32x24xf32>
    %c32 = arith.constant 32 : index
    %c0_1 = arith.constant 0 : index
    %1 = vector.load %arg1[%c32, %c0_1] : memref<56x24xf32, #tpu.memory_space<vmem>>, vector<1x24xf32>
    %c33 = arith.constant 33 : index
    %c0_2 = arith.constant 0 : index
    %2 = vector.load %arg1[%c33, %c0_2] : memref<56x24xf32, #tpu.memory_space<vmem>>, vector<1x24xf32>
    %c40 = arith.constant 40 : index
    %c0_3 = arith.constant 0 : index
    %3 = vector.load %arg1[%c40, %c0_3] : memref<56x24xf32, #tpu.memory_space<vmem>>, vector<16x24xf32>
    %c0_4 = arith.constant 0 : index
    %c0_5 = arith.constant 0 : index
    %4 = vector.load %arg0[%c0_4, %c0_5] : memref<32x32xf32, #tpu.memory_space<vmem>>, vector<32x32xf32>
    %cst = arith.constant dense<0.000000e+00> : vector<32x24xf32>
    %5 = tpu.matmul %4, %0, %cst {dimension_numbers = #tpu.dot_dimension_numbers<[1], [0], [0], [1], [0, 0, 1, 1], [], []>} : vector<32x32xf32>, vector<32x24xf32>, vector<32x24xf32> -> vector<32x24xf32>
    %6 = vector.extract_strided_slice %5 {offsets = [0, 0], sizes = [16, 24], strides = [1, 1]} : vector<32x24xf32> to vector<16x24xf32>
    %7 = vector.broadcast %1 : vector<1x24xf32> to vector<16x24xf32>
    %8 = arith.addf %6, %7 : vector<16x24xf32>
    %cst_6 = arith.constant 0.000000e+00 : f32
    %9 = vector.broadcast %cst_6 : f32 to vector<16x24xf32>
    %10 = arith.maximumf %8, %9 : vector<16x24xf32>
    %11 = vector.extract_strided_slice %5 {offsets = [16, 0], sizes = [16, 24], strides = [1, 1]} : vector<32x24xf32> to vector<16x24xf32>
    %12 = vector.broadcast %2 : vector<1x24xf32> to vector<16x24xf32>
    %13 = arith.addf %11, %12 : vector<16x24xf32>
    %cst_7 = arith.constant 0.000000e+00 : f32
    %14 = vector.broadcast %cst_7 : f32 to vector<16x24xf32>
    %15 = arith.maximumf %13, %14 : vector<16x24xf32>
    %16 = vector.extract_strided_slice %10 {offsets = [0, 0], sizes = [8, 24], strides = [1, 1]} : vector<16x24xf32> to vector<8x24xf32>
    %17 = vector.extract_strided_slice %15 {offsets = [0, 0], sizes = [8, 24], strides = [1, 1]} : vector<16x24xf32> to vector<8x24xf32>
    %18 = tpu.concatenate %16, %16 in 0 : vector<8x24xf32>, vector<8x24xf32> -> vector<16x24xf32>
    %19 = arith.mulf %18, %3 : vector<16x24xf32>
    %cst_8 = arith.constant dense<0.000000e+00> : vector<16x8xf32>
    %20 = tpu.matmul %19, %17, %cst_8 {dimension_numbers = #tpu.dot_dimension_numbers<[1], [1], [0], [0], [0, 0, 1, 0], [], []>} : vector<16x24xf32>, vector<8x24xf32>, vector<16x8xf32> -> vector<16x8xf32>
    %21 = vector.extract_strided_slice %20 {offsets = [0, 0], sizes = [8, 8], strides = [1, 1]} : vector<16x8xf32> to vector<8x8xf32>
    %cst_9 = arith.constant dense<0xFF800000> : vector<8xf32>
    %22 = vector.multi_reduction <maximumf>, %21, %cst_9 [1] : vector<8x8xf32> to vector<8xf32>
    %23 = vector.shape_cast %22 : vector<8xf32> to vector<8x1xf32>
    %cst_10 = arith.constant dense<0xFF800000> : vector<1xf32>
    %24 = vector.multi_reduction <maximumf>, %23, %cst_10 [0] : vector<8x1xf32> to vector<1xf32>
    %25 = vector.shape_cast %24 : vector<1xf32> to vector<1x1xf32>
    %26 = vector.broadcast %25 : vector<1x1xf32> to vector<8x8xf32>
    %27 = arith.subf %21, %26 : vector<8x8xf32>
    %28 = math.exp %27 : vector<8x8xf32>
    %cst_11 = arith.constant dense<0.000000e+00> : vector<8xf32>
    %29 = vector.multi_reduction <add>, %28, %cst_11 [1] : vector<8x8xf32> to vector<8xf32>
    %30 = vector.shape_cast %29 : vector<8xf32> to vector<8x1xf32>
    %cst_12 = arith.constant dense<0.000000e+00> : vector<1xf32>
    %31 = vector.multi_reduction <add>, %30, %cst_12 [0] : vector<8x1xf32> to vector<1xf32>
    %32 = vector.shape_cast %31 : vector<1xf32> to vector<1x1xf32>
    %33 = tpu.reciprocal %32 {approx = true} : vector<1x1xf32> -> vector<1x1xf32>
    %34 = vector.broadcast %33 : vector<1x1xf32> to vector<8x8xf32>
    %35 = arith.mulf %28, %34 : vector<8x8xf32>
    %c0_13 = arith.constant 0 : index
    %c0_14 = arith.constant 0 : index
    %c0_15 = arith.constant 0 : index
    %c0_16 = arith.constant 0 : index
    %36 = vector.load %arg2[%c0_13, %c0_14, %c0_15, %c0_16] : memref<2x2x8x8xf32, #tpu.memory_space<vmem>>, vector<1x1x8x8xf32>
    %37 = vector.shape_cast %36 : vector<1x1x8x8xf32> to vector<8x8xf32>
    %38 = vector.shape_cast %35 : vector<8x8xf32> to vector<1x1x8x8xf32>
    tpu.vector_store %arg2[%c0_13, %c0_14, %c0_15, %c0_16], %38 {strides = array<i32>} : memref<2x2x8x8xf32, #tpu.memory_space<vmem>>, vector<1x1x8x8xf32>,
    %39 = vector.extract_strided_slice %20 {offsets = [8, 0], sizes = [8, 8], strides = [1, 1]} : vector<16x8xf32> to vector<8x8xf32>
    %cst_17 = arith.constant dense<0xFF800000> : vector<8xf32>
    %40 = vector.multi_reduction <maximumf>, %39, %cst_17 [1] : vector<8x8xf32> to vector<8xf32>
    %41 = vector.shape_cast %40 : vector<8xf32> to vector<8x1xf32>
    %cst_18 = arith.constant dense<0xFF800000> : vector<1xf32>
    %42 = vector.multi_reduction <maximumf>, %41, %cst_18 [0] : vector<8x1xf32> to vector<1xf32>
    %43 = vector.shape_cast %42 : vector<1xf32> to vector<1x1xf32>
    %44 = vector.broadcast %43 : vector<1x1xf32> to vector<8x8xf32>
    %45 = arith.subf %39, %44 : vector<8x8xf32>
    %46 = math.exp %45 : vector<8x8xf32>
    %cst_19 = arith.constant dense<0.000000e+00> : vector<8xf32>
    %47 = vector.multi_reduction <add>, %46, %cst_19 [1] : vector<8x8xf32> to vector<8xf32>
    %48 = vector.shape_cast %47 : vector<8xf32> to vector<8x1xf32>
    %cst_20 = arith.constant dense<0.000000e+00> : vector<1xf32>
    %49 = vector.multi_reduction <add>, %48, %cst_20 [0] : vector<8x1xf32> to vector<1xf32>
    %50 = vector.shape_cast %49 : vector<1xf32> to vector<1x1xf32>
    %51 = tpu.reciprocal %50 {approx = true} : vector<1x1xf32> -> vector<1x1xf32>
    %52 = vector.broadcast %51 : vector<1x1xf32> to vector<8x8xf32>
    %53 = arith.mulf %46, %52 : vector<8x8xf32>
    %c0_21 = arith.constant 0 : index
    %c1 = arith.constant 1 : index
    %c0_22 = arith.constant 0 : index
    %c0_23 = arith.constant 0 : index
    %54 = vector.load %arg2[%c0_21, %c1, %c0_22, %c0_23] : memref<2x2x8x8xf32, #tpu.memory_space<vmem>>, vector<1x1x8x8xf32>
    %55 = vector.shape_cast %54 : vector<1x1x8x8xf32> to vector<8x8xf32>
    %56 = vector.shape_cast %53 : vector<8x8xf32> to vector<1x1x8x8xf32>
    tpu.vector_store %arg2[%c0_21, %c1, %c0_22, %c0_23], %56 {strides = array<i32>} : memref<2x2x8x8xf32, #tpu.memory_space<vmem>>, vector<1x1x8x8xf32>,
    %57 = vector.extract_strided_slice %10 {offsets = [8, 0], sizes = [8, 24], strides = [1, 1]} : vector<16x24xf32> to vector<8x24xf32>
    %58 = vector.extract_strided_slice %15 {offsets = [8, 0], sizes = [8, 24], strides = [1, 1]} : vector<16x24xf32> to vector<8x24xf32>
    %59 = tpu.concatenate %57, %57 in 0 : vector<8x24xf32>, vector<8x24xf32> -> vector<16x24xf32>
    %60 = arith.mulf %59, %3 : vector<16x24xf32>
    %cst_24 = arith.constant dense<0.000000e+00> : vector<16x8xf32>
    %61 = tpu.matmul %60, %58, %cst_24 {dimension_numbers = #tpu.dot_dimension_numbers<[1], [1], [0], [0], [0, 0, 1, 0], [], []>} : vector<16x24xf32>, vector<8x24xf32>, vector<16x8xf32> -> vector<16x8xf32>
    %62 = vector.extract_strided_slice %61 {offsets = [0, 0], sizes = [8, 8], strides = [1, 1]} : vector<16x8xf32> to vector<8x8xf32>
    %cst_25 = arith.constant dense<0xFF800000> : vector<8xf32>
    %63 = vector.multi_reduction <maximumf>, %62, %cst_25 [1] : vector<8x8xf32> to vector<8xf32>
    %64 = vector.shape_cast %63 : vector<8xf32> to vector<8x1xf32>
    %cst_26 = arith.constant dense<0xFF800000> : vector<1xf32>
    %65 = vector.multi_reduction <maximumf>, %64, %cst_26 [0] : vector<8x1xf32> to vector<1xf32>
    %66 = vector.shape_cast %65 : vector<1xf32> to vector<1x1xf32>
    %67 = vector.broadcast %66 : vector<1x1xf32> to vector<8x8xf32>
    %68 = arith.subf %62, %67 : vector<8x8xf32>
    %69 = math.exp %68 : vector<8x8xf32>
    %cst_27 = arith.constant dense<0.000000e+00> : vector<8xf32>
    %70 = vector.multi_reduction <add>, %69, %cst_27 [1] : vector<8x8xf32> to vector<8xf32>
    %71 = vector.shape_cast %70 : vector<8xf32> to vector<8x1xf32>
    %cst_28 = arith.constant dense<0.000000e+00> : vector<1xf32>
    %72 = vector.multi_reduction <add>, %71, %cst_28 [0] : vector<8x1xf32> to vector<1xf32>
    %73 = vector.shape_cast %72 : vector<1xf32> to vector<1x1xf32>
    %74 = tpu.reciprocal %73 {approx = true} : vector<1x1xf32> -> vector<1x1xf32>
    %75 = vector.broadcast %74 : vector<1x1xf32> to vector<8x8xf32>
    %76 = arith.mulf %69, %75 : vector<8x8xf32>
    %c1_29 = arith.constant 1 : index
    %c0_30 = arith.constant 0 : index
    %c0_31 = arith.constant 0 : index
    %c0_32 = arith.constant 0 : index
    %77 = vector.load %arg2[%c1_29, %c0_30, %c0_31, %c0_32] : memref<2x2x8x8xf32, #tpu.memory_space<vmem>>, vector<1x1x8x8xf32>
    %78 = vector.shape_cast %77 : vector<1x1x8x8xf32> to vector<8x8xf32>
    %79 = vector.shape_cast %76 : vector<8x8xf32> to vector<1x1x8x8xf32>
    tpu.vector_store %arg2[%c1_29, %c0_30, %c0_31, %c0_32], %79 {strides = array<i32>} : memref<2x2x8x8xf32, #tpu.memory_space<vmem>>, vector<1x1x8x8xf32>,
    %80 = vector.extract_strided_slice %61 {offsets = [8, 0], sizes = [8, 8], strides = [1, 1]} : vector<16x8xf32> to vector<8x8xf32>
    %cst_33 = arith.constant dense<0xFF800000> : vector<8xf32>
    %81 = vector.multi_reduction <maximumf>, %80, %cst_33 [1] : vector<8x8xf32> to vector<8xf32>
    %82 = vector.shape_cast %81 : vector<8xf32> to vector<8x1xf32>
    %cst_34 = arith.constant dense<0xFF800000> : vector<1xf32>
    %83 = vector.multi_reduction <maximumf>, %82, %cst_34 [0] : vector<8x1xf32> to vector<1xf32>
    %84 = vector.shape_cast %83 : vector<1xf32> to vector<1x1xf32>
    %85 = vector.broadcast %84 : vector<1x1xf32> to vector<8x8xf32>
    %86 = arith.subf %80, %85 : vector<8x8xf32>
    %87 = math.exp %86 : vector<8x8xf32>
    %cst_35 = arith.constant dense<0.000000e+00> : vector<8xf32>
    %88 = vector.multi_reduction <add>, %87, %cst_35 [1] : vector<8x8xf32> to vector<8xf32>
    %89 = vector.shape_cast %88 : vector<8xf32> to vector<8x1xf32>
    %cst_36 = arith.constant dense<0.000000e+00> : vector<1xf32>
    %90 = vector.multi_reduction <add>, %89, %cst_36 [0] : vector<8x1xf32> to vector<1xf32>
    %91 = vector.shape_cast %90 : vector<1xf32> to vector<1x1xf32>
    %92 = tpu.reciprocal %91 {approx = true} : vector<1x1xf32> -> vector<1x1xf32>
    %93 = vector.broadcast %92 : vector<1x1xf32> to vector<8x8xf32>
    %94 = arith.mulf %87, %93 : vector<8x8xf32>
    %c1_37 = arith.constant 1 : index
    %c1_38 = arith.constant 1 : index
    %c0_39 = arith.constant 0 : index
    %c0_40 = arith.constant 0 : index
    %95 = vector.load %arg2[%c1_37, %c1_38, %c0_39, %c0_40] : memref<2x2x8x8xf32, #tpu.memory_space<vmem>>, vector<1x1x8x8xf32>
    %96 = vector.shape_cast %95 : vector<1x1x8x8xf32> to vector<8x8xf32>
    %97 = vector.shape_cast %94 : vector<8x8xf32> to vector<1x1x8x8xf32>
    tpu.vector_store %arg2[%c1_37, %c1_38, %c0_39, %c0_40], %97 {strides = array<i32>} : memref<2x2x8x8xf32, #tpu.memory_space<vmem>>, vector<1x1x8x8xf32>,
    return
  }
}

</mosaic_0001>

<bundles_post_ra>
// kernel: tpu_custom_call.1
= control target key start
LH: loop header
LB: loop body
LE: loop exit
PB: predicated region body
PF: predicated region fallthrough
CT: control target
= control target key end

     0   :  { %vm24_vm0 = vcmask 261120   ;;  %s618_s0 = inlined_call_operand.vmem [shape: f32[32,32], index: 0, kind: input, shape index: {}]   ;;  %s619_s1 = inlined_call_operand.vmem [shape: f32[56,24], index: 1, kind: input, shape index: {}]   ;;  %s620_s2 = inlined_call_operand.hbm [shape: f32[2,2,8,8], index: 2, kind: output, shape index: {}]  }
   0x1   :  { %v12_v0 = vld [vmem:[%s619_s1] sm:$0xff]  ;;  %v13_v1 = vld [vmem:[%s619_s1 + $0x8] sm:$0xff]  ;;  %v14_v2 = vld [vmem:[%s619_s1 + $0x10] sm:$0xff] }
   0x2   :  { %v477_v3 = vpack.c.bf16 %v13_v1, %v12_v0  ;;  %v15_v4 = vld [vmem:[%s619_s1 + $0x18] sm:$0xff]  ;;  %v20_v5 = vld [vmem:[%s618_s0] sm:$0xff] }
   0x3   :  { %v481_v6 = vpack.c.bf16 %v15_v4, %v14_v2  ;;  %461 = vmatprep.mubr.msk.f32.mxu0 %vm24_vm0, %v20_v5 }
   0x4   :  { %478 = vmatprep.subr.bf16.mxu0 %v477_v3 }
   0x5   :  { %7 = vsyncpa [#allocation3], 0  ;;  %480 = vmatpush3.bf16.msra.mxu0 %v477_v3  ;;  %v21_v7 = vld [vmem:[%s618_s0 + $0x8] sm:$0xff]  ;;  %v22_v8 = vld [vmem:[%s618_s0 + $0x10] sm:$0xff]  ;;  %vm140_vm1 = vcmask 195584   ;;  %vm225_vm2 = vcmask 64512  }
   0x6   :  { %482 = vmatprep.subr.bf16.mxu0 %v481_v6  ;;  %v23_v9 = vld [vmem:[%s618_s0 + $0x18] sm:$0xff]  ;;  %v431_v10 = vld [vmem:[%s619_s1 + $0x20] ss:$0 sm:$0xff]  ;;  %v432_v14 = vld [vmem:[%s619_s1 + $0x21] ss:$0 sm:$0xff] }
   0x7   :  { %v18_v15 = vld [vmem:[%s619_s1 + $0x28] sm:$0xff]  ;;  %v19_v24 = vld [vmem:[%s619_s1 + $0x30] sm:$0xff]  ;;  %s528_s1 = smov [#allocation2]  }
   0x8   :  { %s416_s4 = sshll.u32 %s528_s1, 4  ;;  %s417_s4 = int_to_ptr.vmem [resolvable:$true] %s416_s4 }
   0x9   :  { %484 = vmatpush3.bf16.msra.mxu0 %v481_v6  ;;  %s504_s5 = scalar_lea.vmem %s417_s4, 512  ;;  %p509_p1 = scmp.lt.s32.totalorder %s417_s4, %s417_s4 }
   0xa   :  { %p505_p0 = scmp.ne.s32.totalorder %s417_s4, %s504_s5  ;;  %p510_p2 = scmp.lt.s32.totalorder %s504_s5, %s504_s5 }
   0xc   :  { %462 = vmatmul.mubr.msk.f32.vlgmr.msra.gmra.mrb[0].mxu0 %vm24_vm0, %v21_v7  ;;  %p511_p3 = por %p510_p2, %p509_p1 }
   0xd   :  { %464 = vmatprep.mubr.msk.f32.mxu0 %vm24_vm0, %v22_v8 }
   0xe   :  { %p512_p4 = pnand %p511_p3, %p505_p0 }
  0x10   :  { %465 = vmatmul.mubr.msk.f32.gmra.mrb[2].mxu0 %vm24_vm0, %v23_v9 }
  0xdf   :  { %v463_v11 = vpop.f32.mrb[0].mxu0 }
  0xe0   :  { %v103_v12 = vpop.f32.mrb[1].mxu0  ;;  %v127_v18 = vadd.f32 %v463_v11, %v431_v10 }
  0xe1   :  { %v126_v13 = vadd.f32 %v431_v10, %v103_v12 }
  0xe2   :  { %v129_v25 = vmax.f32 %v127_v18, 0.0 }
  0xe3   :  { %v128_v16 = vmax.f32 %v126_v13, 0.0  ;;  %v466_v17 = vpop.f32.mrb[2].mxu0 }
  0xe4   :  { %v113_v19 = vpop.f32.mrb[3].mxu0  ;;  %v135_v20 = vadd.f32 %v466_v17, %v432_v14  ;;  %v275_v28 = vmul.f32 %v129_v25, %v18_v15  ;;  %v276_v29 = vmul.f32 %v129_v25, %v19_v24 }
  0xe5   :  { %v134_v21 = vadd.f32 %v432_v14, %v113_v19  ;;  %v138_v22 = vmul.f32 %v128_v16, %v18_v15  ;;  %v139_v27 = vmul.f32 %v128_v16, %v19_v24 }
  0xe6   :  { %v137_v26 = vmax.f32 %v135_v20, 0.0 }
  0xe7   :  { %v136_v23 = vmax.f32 %v134_v21, 0.0  ;;  %469 = vmatprep.mubr.msk.f32.mxu1 %vm140_vm1, %v138_v22 }
  0xe9   :  { %467 = vmatprep.subr.msk.mxu1 %vm140_vm1, %v136_v23 }
  0xea   :  { %468 = vmatpush3.xpose.msk.msra.mxu1 %vm140_vm1, %v136_v23 }
  0xeb   :  { %472 = vmatprep.subr.msk.mxu1 %vm140_vm1, %v137_v26 }
  0xed   :  { %470 = vmatmul.mubr.msk.f32.vlgmr.msra.gmra.mrb[0].mxu1 %vm140_vm1, %v139_v27 }
  0xee   :  { %473 = vmatpush3.xpose.msk.msra.mxu1 %vm140_vm1, %v137_v26  ;;  %474 = vmatprep.mubr.msk.f32.mxu1 %vm140_vm1, %v275_v28 }
  0xf1   :  { %475 = vmatmul.mubr.msk.f32.vlgmr.msra.gmra.mrb[2].mxu1 %vm140_vm1, %v276_v29 }
 0x1c0   :  { %v471_v30 = vpop.f32.mrb[0].mxu1 }
 0x1c1   :  { %v216_v31 = vpop.f32.mrb[1].mxu1  ;;  %v250_v36 = vsel %vm225_vm2, %v471_v30, -inf }
 0x1c2   :  { %v226_v32 = vsel %vm225_vm2, %v216_v31, -inf }
 0x1c3   :  { %227 = vmax.xlane.f32.xlu0 %v226_v32 }
 0x1c4   :  { %v476_v33 = vpop.f32.mrb[2].mxu1 }
 0x1c5   :  { %v352_v34 = vpop.f32.mrb[3].mxu1  ;;  %v386_v37 = vsel %vm225_vm2, %v476_v33, -inf }
 0x1c6   :  { %v361_v35 = vsel %vm225_vm2, %v352_v34, -inf }
 0x1c7   :  { %362 = vmax.xlane.f32.xlu1 %v361_v35  ;;  %251 = vmax.xlane.f32.xlu0 %v250_v36 }
 0x1cb   :  { %387 = vmax.xlane.f32.xlu1 %v386_v37 }
 0x250   :  { %v228_v38 = vpop.xlane.xlu0 %227 }
 0x251   :  { %v229_v39 = vrot.slane %v228_v38, 4 }
 0x253   :  { %v230_v40 = vmax.f32 %v228_v38, %v229_v39 }
 0x254   :  { %v363_v41 = vpop.xlane.xlu1 %362  ;;  %v252_v42 = vpop.xlane.xlu0 %251 }
 0x255   :  { %v231_v43 = vrot.slane %v230_v40, 2  ;;  %v364_v44 = vrot.slane %v363_v41, 4  ;;  %v253_v45 = vrot.slane %v252_v42, 4 }
 0x257   :  { %v232_v46 = vmax.f32 %v230_v40, %v231_v43  ;;  %v365_v47 = vmax.f32 %v363_v41, %v364_v44  ;;  %v254_v48 = vmax.f32 %v252_v42, %v253_v45 }
 0x258   :  { %v388_v49 = vpop.xlane.xlu1 %387 }
 0x259   :  { %v233_v50 = vrot.slane %v232_v46, 1  ;;  %v366_v51 = vrot.slane %v365_v47, 2  ;;  %v255_v52 = vrot.slane %v254_v48, 2  ;;  %v389_v53 = vrot.slane %v388_v49, 4 }
 0x25b   :  { %v234_v54 = vmax.f32 %v232_v46, %v233_v50  ;;  %v367_v55 = vmax.f32 %v365_v47, %v366_v51  ;;  %v256_v56 = vmax.f32 %v254_v48, %v255_v52  ;;  %v390_v57 = vmax.f32 %v388_v49, %v389_v53 }
 0x25d   :  { %v235_v58 = vsub.f32 %v216_v31, %v234_v54  ;;  %v368_v59 = vrot.slane %v367_v55, 1  ;;  %v257_v60 = vrot.slane %v256_v56, 1  ;;  %v391_v61 = vrot.slane %v390_v57, 2 }
 0x25f   :  { %v236_v62 = vmul.f32 1.442695, %v235_v58  ;;  %v369_v63 = vmax.f32 %v367_v55, %v368_v59  ;;  %v258_v0 = vmax.f32 %v256_v56, %v257_v60  ;;  %v392_v1 = vmax.f32 %v390_v57, %v391_v61 }
 0x261   :  { %488 = vpow2.f32 %v236_v62  ;;  %v370_v2 = vsub.f32 %v352_v34, %v369_v63  ;;  %v259_v3 = vsub.f32 %v471_v30, %v258_v0  ;;  %v393_v4 = vrot.slane %v392_v1, 1 }
 0x263   :  { %v371_v5 = vmul.f32 1.442695, %v370_v2  ;;  %v260_v6 = vmul.f32 1.442695, %v259_v3  ;;  %v394_v7 = vmax.f32 %v392_v1, %v393_v4 }
 0x265   :  { %490 = vpow2.f32 %v371_v5  ;;  %v395_v8 = vsub.f32 %v476_v33, %v394_v7 }
 0x266   :  { %492 = vpow2.f32 %v260_v6 }
 0x267   :  { %v396_v9 = vmul.f32 1.442695, %v395_v8 }
 0x269   :  { %494 = vpow2.f32 %v396_v9 }
 0x26b   :  { %v489_v10 = vpop.eup %488 }
 0x26c   :  { %v238_v11 = vsel %vm225_vm2, %v489_v10, 0.0 }
 0x26d   :  { %239 = vadd.xlane.f32.xlu0 %v238_v11 }
 0x26f   :  { %v491_v12 = vpop.eup %490 }
 0x270   :  { %v493_v13 = vpop.eup %492  ;;  %v373_v14 = vsel %vm225_vm2, %v491_v12, 0.0 }
 0x271   :  { %374 = vadd.xlane.f32.xlu0 %v373_v14  ;;  %v262_v15 = vsel %vm225_vm2, %v493_v13, 0.0 }
 0x272   :  { %263 = vadd.xlane.f32.xlu1 %v262_v15 }
 0x273   :  { %v495_v16 = vpop.eup %494 }
 0x274   :  { %v398_v17 = vsel %vm225_vm2, %v495_v16, 0.0 }
 0x276   :  { %399 = vadd.xlane.f32.xlu1 %v398_v17 }
 0x2fa   :  { %v240_v18 = vpop.xlane.xlu0 %239 }
 0x2fb   :  { %v241_v19 = vrot.slane %v240_v18, 4 }
 0x2fd   :  { %v242_v20 = vadd.f32 %v241_v19, %v240_v18 }
 0x2fe   :  { %v375_v21 = vpop.xlane.xlu0 %374 }
 0x2ff   :  { %v243_v22 = vrot.slane %v242_v20, 2  ;;  %v264_v23 = vpop.xlane.xlu1 %263  ;;  %v376_v24 = vrot.slane %v375_v21, 4 }
 0x300   :  { %v265_v25 = vrot.slane %v264_v23, 4 }
 0x301   :  { %v244_v26 = vadd.f32 %v243_v22, %v242_v20  ;;  %v377_v27 = vadd.f32 %v376_v24, %v375_v21 }
 0x302   :  { %v266_v28 = vadd.f32 %v265_v25, %v264_v23 }
 0x303   :  { %v245_v29 = vrot.slane %v244_v26, 1  ;;  %v378_v30 = vrot.slane %v377_v27, 2  ;;  %v400_v31 = vpop.xlane.xlu1 %399 }
 0x304   :  { %v267_v32 = vrot.slane %v266_v28, 2  ;;  %v401_v33 = vrot.slane %v400_v31, 4 }
 0x305   :  { %v246_v34 = vadd.f32 %v245_v29, %v244_v26  ;;  %v379_v35 = vadd.f32 %v378_v30, %v377_v27 }
 0x306   :  { %v268_v36 = vadd.f32 %v267_v32, %v266_v28  ;;  %v402_v37 = vadd.f32 %v401_v33, %v400_v31 }
 0x307   :  { %496 = vrcp.f32 %v246_v34  ;;  %v380_v38 = vrot.slane %v379_v35, 1 }
 0x308   :  { %v269_v39 = vrot.slane %v268_v36, 1  ;;  %v403_v40 = vrot.slane %v402_v37, 2 }
 0x309   :  { %v381_v41 = vadd.f32 %v380_v38, %v379_v35 }
 0x30a   :  { %v270_v42 = vadd.f32 %v269_v39, %v268_v36  ;;  %v404_v43 = vadd.f32 %v403_v40, %v402_v37 }
 0x30b   :  { %498 = vrcp.f32 %v381_v41 }
 0x30c   :  { %500 = vrcp.f32 %v270_v42  ;;  %v405_v44 = vrot.slane %v404_v43, 1 }
 0x30e   :  { %v406_v45 = vadd.f32 %v405_v44, %v404_v43 }
 0x310   :  { %502 = vrcp.f32 %v406_v45 }
 0x311   :  { %v497_v46 = vpop.eup %496 }
 0x312   :  { %v248_v47 = vmul.f32 %v497_v46, %v489_v10 }
 0x314   :  { %249 = vst.msk [vmem:[#allocation2] sm:$0xff] %vm225_vm2, %v248_v47 }
 0x315   :  { %v499_v48 = vpop.eup %498 }
 0x316   :  { %v501_v49 = vpop.eup %500  ;;  %v383_v50 = vmul.f32 %v499_v48, %v491_v12 }
 0x317   :  { %v272_v51 = vmul.f32 %v501_v49, %v493_v13 }
 0x318   :  { %385 = vst.msk [vmem:[#allocation2 + $0x10] sm:$0xff] %vm225_vm2, %v383_v50 }
 0x319   :  { %274 = vst.msk [vmem:[#allocation2 + $0x8] sm:$0xff] %vm225_vm2, %v272_v51 }
 0x31a   :  { %v503_v52 = vpop.eup %502 }
 0x31b   :  { %v408_v53 = vmul.f32 %v503_v52, %v495_v16 }
 0x31d   :  { %410 = vst.msk [vmem:[#allocation2 + $0x18] sm:$0xff] %vm225_vm2, %v408_v53 }
 0x31e   :  { %515 = shalt.err (!%p512_p4)
}
 0x31f   :  { %s516_s8 = scalar_lea.hbm %s620_s2, 512 }
 0x320   :  { %p517_p5 = scmp.ne.s32.totalorder %s620_s2, %s516_s8  ;;  %p520_p6 = scmp.lt.u32.totalorder %s516_s8, %s620_s2 }
 0x322   :  { %p522_p7 = pnand %p520_p6, %p517_p5 }
 0x324   :  { %525 = shalt.err (!%p522_p7)
}
 0x325   :  { %s529_s13 = smov 128   ;;  %s530_s14 = smov 8  }
 0x326   :  { %422 = dma.vmem_to_hbm [thread:$0]  %s417_s4, 512, %s620_s2, [#allocation3], %s529_s13, %s529_s13, %s530_s14  }
 0x327   :  { %526 = dma.done.wait [#allocation3], 512  }
 0x328   :  { %527 = vsyncadd [#allocation3], 4294966784 }
 0x329   :  { %426 = vsyncpa [#allocation3], 1 }

</bundles_post_ra>
